<compile_context>
chip_gen: v5e
topology: v5e:2x2
jax: 0.10.0
libtpu: 0.0.40
codegen_flags: <defaults>
</compile_context>

<pallas_src>
import math

import jax
import jax.numpy as jnp
from jax.experimental import pallas as pl
from jax.experimental.pallas import tpu as pltpu


_DEFAULT_MAX_BLOCK_BYTES = 8 << 20     # ~8 MiB per block -> ~32 MiB double-buffered
_MIN_GRID_STEPS = 4                    # target grid length so the pipeline overlaps
_VMEM_LIMIT_CAP = 48 << 20             # stays under v7x's 64 MiB physical VMEM


# ---------------------------------------------------------------- kernel ----

def _add_row_bias_kernel(x_ref, b_ref, o_ref):
    # x: (TR, TC), b: (1, TC) -> bias varies along lanes, broadcasts over rows.
    # One whole-block store (single unmasked vst stream when TC is lane-dense).
    o_ref[...] = x_ref[...] + b_ref[...]


# ---------------------------------------------------------------- helpers ---

def _sublane(dtype):
    """Sublane packing granularity: 8 (f32), 16 (bf16/f16), 32 (int8/fp8)."""
    itemsize = jnp.dtype(dtype).itemsize
    return 8 * max(1, 4 // max(itemsize, 1))


def _lane_fold(nrows, ncols):
    """Smallest g (dividing nrows) that makes g*ncols a multiple of 128 lanes."""
    if ncols % 128 == 0:
        return 1
    g = 128 // math.gcd(ncols, 128)
    if g > 1 and nrows % g == 0:
        return g
    return 1


def _choose_tiles(rows, cols, itemsize, sublane, max_block_bytes,
                  min_steps=_MIN_GRID_STEPS):
    """Pick (row_tile, col_tile) under the (sublane, 128) rule and VMEM budget,
    while keeping the grid long enough to pipeline / shard across TCs."""
    max_block_bytes = max(max_block_bytes, 128 * sublane * itemsize)

    # ---- lane (last-dim) tile: full extent if it fits, else multiples of 128 ----
    if cols <= 128 or sublane * cols * itemsize <= max_block_bytes:
        tc = cols                                        # full extent: always legal
    else:
        max_c = max_block_bytes // (sublane * itemsize)
        tc = max(128, (max_c // 128) * 128)              # multiple of 128: legal
    n_col_blocks = pl.cdiv(cols, tc)

    # ---- sublane (second-to-last) tile: cap by bytes AND by min grid steps ----
    max_r_bytes = max(1, max_block_bytes // (tc * itemsize))
    want_row_blocks = max(1, -(-min_steps // n_col_blocks))       # ceil
    max_r_steps = -(-rows // want_row_blocks)                     # ceil
    max_r = min(max_r_bytes, max_r_steps)
    if max_r >= rows:
        tr = rows                                        # full extent: always legal
    else:
        tr = max(sublane, (max_r // sublane) * sublane)  # multiple of packing
        tr = min(tr, rows)
    return tr, tc


def _add_bias_rows(x2, bias_row, max_block_bytes):
    """Core streaming kernel: x2 (rows, cols) + bias_row (1, cols)."""
    rows, cols = x2.shape
    itemsize = jnp.dtype(x2.dtype).itemsize
    sublane = _sublane(x2.dtype)
    tr, tc = _choose_tiles(rows, cols, itemsize, sublane, max_block_bytes)
    grid = (pl.cdiv(rows, tr), pl.cdiv(cols, tc))

    # VMEM limit derived from the real footprint: double-buffered in + out blocks
    # plus the bias block, with slack.  Clamped well under v7x's 64 MiB physical.
    block_bytes = tr * tc * itemsize
    vmem_limit = 4 * block_bytes + 2 * tc * itemsize + (2 << 20)
    vmem_limit = int(min(max(vmem_limit, 4 << 20), _VMEM_LIMIT_CAP))

    cost = pl.CostEstimate(
        flops=rows * cols,
        transcendentals=0,
        bytes_accessed=2 * rows * cols * itemsize + cols * itemsize,
    )

    return pl.pallas_call(
        _add_row_bias_kernel,
        out_shape=jax.ShapeDtypeStruct((rows, cols), x2.dtype),
        grid_spec=pl.GridSpec(
            grid=grid,
            in_specs=[
                pl.BlockSpec((tr, tc), lambda i, j: (i, j)),
                pl.BlockSpec((1, tc), lambda i, j: (0, j)),
            ],
            out_specs=pl.BlockSpec((tr, tc), lambda i, j: (i, j)),
        ),
        compiler_params=pltpu.CompilerParams(
            dimension_semantics=("parallel", "parallel"),
            vmem_limit_bytes=vmem_limit,
        ),
        cost_estimate=cost,
    )(x2, bias_row)


# ---------------------------------------------------------------- wrapper ---

def add_bias(x, bias_param, *, min_pallas_bytes=1 << 20,
             max_block_bytes=_DEFAULT_MAX_BLOCK_BYTES):
    """Equivalent of AddBias.forward.

    Args:
      x:                (B, D) or (N, C, H, W) array.
      bias_param:       (D, 1) array (matches nn.Parameter(bias.unsqueeze(1))).
      min_pallas_bytes: below this total size use a plain jnp add (a standalone
                        pallas_call blocks XLA fusion and can't win at KB scale).
      max_block_bytes:  per-block VMEM budget for tiling.
    """
    d = bias_param.shape[0]
    out_dtype = jnp.result_type(x.dtype, bias_param.dtype)   # PyTorch-style promotion
    xb = x.astype(out_dtype)
    nbytes = xb.size * jnp.dtype(out_dtype).itemsize

    if x.ndim == 2:
        b, dx = x.shape
        assert dx == d
        bias_row = bias_param.reshape(1, d).astype(out_dtype)   # bias.t().view(1, -1)
        if nbytes < min_pallas_bytes:
            return xb + bias_row                                 # tiny: fused XLA add
        g = _lane_fold(b, d)
        if g > 1:                                                # lane-densify narrow D
            out = _add_bias_rows(xb.reshape(b // g, g * d),
                                 jnp.tile(bias_row, (1, g)), max_block_bytes)
            return out.reshape(b, d)
        return _add_bias_rows(xb, bias_row, max_block_bytes)

    elif x.ndim == 4:
        n, c, h, w = x.shape
        assert c == d
        if nbytes < min_pallas_bytes:
            return xb + bias_param.reshape(1, c, 1, 1).astype(out_dtype)
        chw = c * h * w
        # Per-channel bias expanded to a lane-dense (1, C*H*W) row.
        bias_row = jnp.broadcast_to(
            bias_param.reshape(c, 1).astype(out_dtype), (c, h * w)
        ).reshape(1, chw)
        x2 = xb.reshape(n, chw)
        g = _lane_fold(n, chw)
        if g > 1:
            x2 = x2.reshape(n // g, g * chw)
            bias_row = jnp.tile(bias_row, (1, g))
        out = _add_bias_rows(x2, bias_row, max_block_bytes)
        return out.reshape(n, c, h, w)

    else:
        raise ValueError(f"AddBias expects 2D or 4D input, got ndim={x.ndim}")


# ------------------------------------------------------------------- main ---

if __name__ == "__main__":
    key = jax.random.PRNGKey(0)
    keys = jax.random.split(key, 8)

    # --- 4D case: NCHW, batch=2, channels=4, spatial=16 (Pallas path forced) ---
    N, C, H, W = 2, 4, 16, 16
    x4 = jax.random.normal(keys[0], (N, C, H, W), dtype=jnp.float32)
    bias_c = (jnp.arange(C, dtype=jnp.float32) * 0.1 - 0.15).reshape(C, 1)
    out4 = add_bias(x4, bias_c, min_pallas_bytes=0)
    jax.block_until_ready(out4)
    ref4 = x4 + bias_c.reshape(1, C, 1, 1)
    assert out4.shape == x4.shape and out4.dtype == x4.dtype
    assert jnp.allclose(out4, ref4, atol=1e-6)

    # --- 2D case: batch=2, features=32 (Pallas path forced) ---
    B, D = 2, 32
    x2 = jax.random.normal(keys[1], (B, D), dtype=jnp.float32)
    bias_d = jnp.linspace(-1.0, 1.0, D, dtype=jnp.float32).reshape(D, 1)
    out2 = add_bias(x2, bias_d, min_pallas_bytes=0)
    jax.block_until_ready(out2)
    ref2 = x2 + bias_d.reshape(1, D)
    assert out2.shape == x2.shape and out2.dtype == x2.dtype
    assert jnp.allclose(out2, ref2, atol=1e-6)

    # --- 2D multi-step grid: exercises row tiling / double-buffered pipeline ---
    Bt, Dt = 2048, 256
    xt = jax.random.normal(keys[2], (Bt, Dt), dtype=jnp.float32)
    bias_t = jnp.linspace(-0.5, 0.5, Dt, dtype=jnp.float32).reshape(Dt, 1)
    out_t = add_bias(xt, bias_t, min_pallas_bytes=0, max_block_bytes=64 * 1024)
    jax.block_until_ready(out_t)
    assert jnp.allclose(out_t, xt + bias_t.reshape(1, Dt), atol=1e-6)

    # --- 2D narrow-D lane fold: D=32 folded to 128 lanes (no masked stores) ---
    Bf, Df = 2048, 32
    xf = jax.random.normal(keys[3], (Bf, Df), dtype=jnp.float32)
    bias_f = jnp.linspace(-0.3, 0.3, Df, dtype=jnp.float32).reshape(Df, 1)
    out_f = add_bias(xf, bias_f, min_pallas_bytes=0)
    jax.block_until_ready(out_f)
    assert jnp.allclose(out_f, xf + bias_f.reshape(1, Df), atol=1e-6)

    # --- 2D wide rows: second grid axis tiles the lane dim in 128-multiples ---
    Bw, Dw = 16, 4096
    xw = jax.random.normal(keys[4], (Bw, Dw), dtype=jnp.float32)
    bias_w = jnp.linspace(-1.0, 1.0, Dw, dtype=jnp.float32).reshape(Dw, 1)
    out_w = add_bias(xw, bias_w, min_pallas_bytes=0, max_block_bytes=64 * 1024)
    jax.block_until_ready(out_w)
    assert jnp.allclose(out_w, xw + bias_w.reshape(1, Dw), atol=1e-6)

    # --- 4D multi-tile grid: (N, C*H*W) layout, row + lane tiling ---
    N2, C2, H2, W2 = 16, 8, 16, 16
    x4b = jax.random.normal(keys[5], (N2, C2, H2, W2), dtype=jnp.float32)
    bias_c2 = jnp.linspace(-1.0, 1.0, C2, dtype=jnp.float32).reshape(C2, 1)
    out4b = add_bias(x4b, bias_c2, min_pallas_bytes=0, max_block_bytes=32 * 1024)
    jax.block_until_ready(out4b)
    assert jnp.allclose(out4b, x4b + bias_c2.reshape(1, C2, 1, 1), atol=1e-6)

    # --- uneven row count (partial last block) ---
    Bp, Dp = 100, 384
    xp = jax.random.normal(keys[6], (Bp, Dp), dtype=jnp.float32)
    bias_p = jnp.linspace(-0.2, 0.2, Dp, dtype=jnp.float32).reshape(Dp, 1)
    out_p = add_bias(xp, bias_p, min_pallas_bytes=0)
    jax.block_until_ready(out_p)
    assert jnp.allclose(out_p, xp + bias_p.reshape(1, Dp), atol=1e-6)

    # --- bf16: dtype-aware sublane (16) rounding ---
    Bb, Db = 128, 256
    xbf = jax.random.normal(keys[7], (Bb, Db), dtype=jnp.float32).astype(jnp.bfloat16)
    bias_b = jnp.linspace(-1.0, 1.0, Db, dtype=jnp.float32).astype(jnp.bfloat16).reshape(Db, 1)
    out_b = add_bias(xbf, bias_b, min_pallas_bytes=0)
    jax.block_until_ready(out_b)
    ref_b = xbf + bias_b.reshape(1, Db)
    assert out_b.dtype == jnp.bfloat16
    assert jnp.allclose(out_b.astype(jnp.float32), ref_b.astype(jnp.float32), atol=1e-2)

    # --- tiny-tensor fallback path (default threshold -> plain jnp add) ---
    out_small = add_bias(x2, bias_d)
    jax.block_until_ready(out_small)
    assert jnp.allclose(out_small, ref2, atol=1e-6)

    print("KERNEL_OK")
</pallas_src>

<mosaic_0001>
module attributes {stable_mosaic.version = 11 : i64} {
  func.func @_add_row_bias_kernel(%arg0: i32, %arg1: i32, %arg2: memref<2x1024xf32, #tpu.memory_space<vmem>>, %arg3: memref<1x1024xf32, #tpu.memory_space<vmem>>, %arg4: memref<2x1024xf32, #tpu.memory_space<vmem>>) attributes {dimension_semantics = [#tpu.dimension_semantics<parallel>, #tpu.dimension_semantics<parallel>], iteration_bounds = array<i64: 1, 1>, scalar_prefetch = 0 : i64, scratch_operands = 0 : i64, tpu.core_type = #tpu.core_type<tc>, window_params = [{transform_indices = @transform_0, window_bounds = array<i64: 2, 1024>}, {transform_indices = @transform_1, window_bounds = array<i64: 1, 1024>}, {transform_indices = @transform_2, window_bounds = array<i64: 2, 1024>}]} {
    %c0 = arith.constant 0 : index
    %c0_0 = arith.constant 0 : index
    %0 = vector.load %arg2[%c0, %c0_0] : memref<2x1024xf32, #tpu.memory_space<vmem>>, vector<2x1024xf32>
    %c0_1 = arith.constant 0 : index
    %c0_2 = arith.constant 0 : index
    %1 = vector.load %arg3[%c0_1, %c0_2] : memref<1x1024xf32, #tpu.memory_space<vmem>>, vector<1x1024xf32>
    %2 = vector.broadcast %1 : vector<1x1024xf32> to vector<2x1024xf32>
    %3 = arith.addf %0, %2 : vector<2x1024xf32>
    %c0_3 = arith.constant 0 : index
    %c0_4 = arith.constant 0 : index
    %4 = vector.load %arg4[%c0_3, %c0_4] : memref<2x1024xf32, #tpu.memory_space<vmem>>, vector<2x1024xf32>
    tpu.vector_store %arg4[%c0_3, %c0_4], %3 {strides = array<i32>} : memref<2x1024xf32, #tpu.memory_space<vmem>>, vector<2x1024xf32>,
    return
  }
  func.func @transform_0(%arg0: i32, %arg1: i32) -> (i32, i32) {
    %c0_i32 = arith.constant 0 : i32
    return %arg0, %arg1 : i32, i32
  }
  func.func @transform_1(%arg0: i32, %arg1: i32) -> (i32, i32) {
    %c0_i32 = arith.constant 0 : i32
    %c0_i32_0 = arith.constant 0 : i32
    return %c0_i32, %arg1 : i32, i32
  }
  func.func @transform_2(%arg0: i32, %arg1: i32) -> (i32, i32) {
    %c0_i32 = arith.constant 0 : i32
    return %arg0, %arg1 : i32, i32
  }
}

</mosaic_0001>

<bundles_post_ra>
// kernel: tpu_custom_call.1
= control target key start
LH: loop header
LB: loop body
LE: loop exit
PB: predicated region body
PF: predicated region fallthrough
CT: control target
= control target key end

     0   :  { %7 = vsyncpa [#allocation3], 0  ;;  %s203_s0 = inlined_call_operand.hbm [shape: f32[2,1024], index: 0, kind: input, shape index: {}]   ;;  %s204_s1 = inlined_call_operand.hbm [shape: f32[1,1024], index: 1, kind: input, shape index: {}]   ;;  %s205_s2 = inlined_call_operand.hbm [shape: f32[2,1024], index: 2, kind: output, shape index: {}]  }
   0x1   :  { %8 = vsyncpa [#allocation6], 0 }
   0x2   :  { %9 = vsyncpa [#allocation4], 0  ;;  %s15_s11 = sshll.u32 %s203_s0, 4  ;;  %s172_s12 = smov [#allocation2]   ;;  %s16_s11 = int_to_ptr.hbm [resolvable:$true] %s15_s11 }
   0x3   :  { %s17_s13 = sshll.u32 %s172_s12, 4  ;;  %s26_s16 = sshll.u32 %s204_s1, 4  ;;  %s18_s13 = int_to_ptr.vmem [resolvable:$true] %s17_s13  ;;  %s27_s16 = int_to_ptr.hbm [resolvable:$true] %s26_s16 }
   0x4   :  { %20 = dma.hbm_to_vmem [thread:$0]  %s16_s11, 256, %s18_s13, [#allocation3]  }
   0x5   :  { %s173_s17 = smov [#allocation5]  }
   0x6   :  { %s28_s18 = sshll.u32 %s173_s17, 4  ;;  %s29_s18 = int_to_ptr.vmem [resolvable:$true] %s28_s18 }
   0x7   :  { %31 = dma.hbm_to_vmem [thread:$0]  %s27_s16, 128, %s29_s18, [#allocation6]  }
   0x8   :  { %166 = dma.done.wait [#allocation3], 256  }
   0x9   :  { %167 = vsyncadd [#allocation3], 4294967040 }
   0xa   :  { %168 = dma.done.wait [#allocation6], 128  }
   0xb   :  { %169 = vsyncadd [#allocation6], 4294967168  ;;  %v42_v0 = vld [vmem:[#allocation5] sm:$0xff]  ;;  %vm58_vm0 = vcmask 1041408   ;;  %vm60_vm1 = vcmask 1045508   ;;  %vm62_vm2 = vcmask 1043456  }
   0xc   :  { %v44_v1 = vperm.slane %v42_v0, 0  ;;  %v45_v2 = vperm.slane %v42_v0, 1  ;;  %v46_v3 = vperm.slane %v42_v0, 2  ;;  %v47_v4 = vperm.slane %v42_v0, 3  ;;  %v40_v12 = vld [vmem:[#allocation2] sm:$0xff]  ;;  %v41_v18 = vld [vmem:[#allocation2 + $0x8] sm:$0xff] }
   0xd   :  { %v48_v5 = vperm.slane %v42_v0, 4  ;;  %v49_v6 = vperm.slane %v42_v0, 5  ;;  %v50_v7 = vperm.slane %v42_v0, 6  ;;  %v51_v8 = vperm.slane %v42_v0, 7  ;;  %s174_s0 = smov [#allocation7]   ;;  %s80_s21 = sshll.u32 %s205_s2, 4  ;;  %s81_s21 = int_to_ptr.hbm [resolvable:$true] %s80_s21 }
   0xe   :  { %v52_v9 = vrot.slane %v45_v2, 6  ;;  %v53_v10 = vrot.slane %v46_v3, 4  ;;  %v54_v11 = vrot.slane %v47_v4, 2  ;;  %s78_s1 = sshll.u32 %s174_s0, 4  ;;  %s79_s1 = int_to_ptr.vmem [resolvable:$true] %s78_s1 }
   0xf   :  { %v55_v13 = vrot.slane %v49_v6, 6  ;;  %v56_v14 = vrot.slane %v50_v7, 4  ;;  %v57_v15 = vrot.slane %v51_v8, 2 }
  0x10   :  { %v59_v16 = vsel %vm58_vm0, %v44_v1, %v52_v9  ;;  %v61_v17 = vsel %vm60_vm1, %v53_v10, %v54_v11 }
  0x11   :  { %v63_v19 = vsel %vm62_vm2, %v59_v16, %v61_v17  ;;  %v64_v20 = vsel %vm58_vm0, %v48_v5, %v55_v13  ;;  %v65_v21 = vsel %vm60_vm1, %v56_v14, %v57_v15 }
  0x12   :  { %v69_v22 = vadd.f32 %v63_v19, %v40_v12  ;;  %v66_v23 = vsel %vm62_vm2, %v64_v20, %v65_v21 }
  0x13   :  { %v70_v24 = vadd.f32 %v66_v23, %v41_v18 }
  0x14   :  { %71 = vst [vmem:[#allocation7] sm:$0xff] %v69_v22 }
  0x15   :  { %72 = vst [vmem:[#allocation7 + $0x8] sm:$0xff] %v70_v24 }
  0x16   :  { %83 = dma.vmem_to_hbm [thread:$0]  %s79_s1, 256, %s81_s21, [#allocation4]  }
  0x17   :  { %170 = dma.done.wait [#allocation4], 256  }
  0x18   :  { %171 = vsyncadd [#allocation4], 4294967040 }
  0x19   :  { %88 = vsyncpa [#allocation3], 1 }
  0x1a   :  { %89 = vsyncpa [#allocation6], 1 }
  0x1b   :  { %90 = vsyncpa [#allocation4], 1 }

</bundles_post_ra>
